<compile_context>
chip_gen: v6e
topology: v6e:2x2x1
jax: 0.10.0
libtpu: 0.0.40
codegen_flags: <defaults>
</compile_context>

<pallas_src>
import functools

import jax
import jax.numpy as jnp
from jax.experimental import pallas as pl
from jax.experimental.pallas import tpu as pltpu


# ---------------------------------------------------------------------------
# Kernels
# ---------------------------------------------------------------------------

def _adain_fused_kernel(ab_ref, x_ref, gamma_ref, beta_ref, o_ref, *, eps, count):
    """Fused single-pass kernel: one grid step = one channel tile, full (N, HW).

    ab_ref    : SMEM (2,)        [a, b]  (scalar-prefetched)
    x_ref     : VMEM (N, tc, HW) input tile
    gamma_ref : VMEM (C, 1)      BN affine weight (full array, fetched once)
    beta_ref  : VMEM (C, 1)      BN affine bias   (full array, fetched once)
    o_ref     : VMEM (N, tc, HW) output tile
    """
    tc = x_ref.shape[1]
    C = gamma_ref.shape[0]

    xf = x_ref[...].astype(jnp.float32)

    # Single sweep: sum and sum-of-squares, reduced over the lane axis (H*W)
    # then the batch axis. Shapes stay >= 2D (Mosaic-friendly).
    s1 = jnp.sum(jnp.sum(xf, axis=2, keepdims=True), axis=0, keepdims=True)
    s2 = jnp.sum(jnp.sum(xf * xf, axis=2, keepdims=True), axis=0, keepdims=True)

    inv_cnt = 1.0 / count
    mean = s1 * inv_cnt                                   # (1, tc, 1)
    # Biased variance, E[x^2] - mean^2 (single pass; clamp tiny negatives).
    var = jnp.maximum(s2 * inv_cnt - mean * mean, 0.0)    # (1, tc, 1)
    inv = jax.lax.rsqrt(var + eps)                        # (1, tc, 1)

    a = ab_ref[0]
    b = ab_ref[1]

    if tc == C:
        g = gamma_ref[...]
        bt = beta_ref[...]
    else:
        # tc is a multiple of 8 whenever the grid has >1 channel tile, so the
        # dynamic sublane slice below is always 8-aligned.
        start = pl.multiple_of(pl.program_id(0) * tc, 8)
        g = gamma_ref[pl.ds(start, tc), :]
        bt = beta_ref[pl.ds(start, tc), :]
    g = g[None, :, :]                                     # (1, tc, 1)
    bt = bt[None, :, :]                                   # (1, tc, 1)

    # Fold BN affine + the a/b mix into one per-channel scale/offset:
    #   y = a*x + b*((x - mean)*inv*g + bt) = alpha*x + offset
    coef = (b * g) * inv
    alpha = a + coef
    offset = b * bt - coef * mean

    # TODO(synk): on v6e/v7x with bf16 inputs the apply could run in bf16
    # (halves VALU work / vreg pressure); kept in f32 because the kernel is
    # HBM-bound and f32 keeps the per-channel offset cancellation-safe.
    o_ref[...] = (xf * alpha + offset).astype(o_ref.dtype)


def _adain_stats_kernel(x_ref, s1_ref, s2_ref, *, hw_total, mask_tail):
    """Two-pass path, pass 1: accumulate per-channel s1/s2 over spatial tiles.

    Grid = (channel_tiles [parallel], hw_tiles [arbitrary]).
    x_ref  : VMEM (N, tc, thw)
    s1_ref : VMEM (tc, 1)  resident accumulator across the hw axis
    s2_ref : VMEM (tc, 1)
    """
    j = pl.program_id(1)
    xf = x_ref[...].astype(jnp.float32)

    if mask_tail:
        # Last spatial tile may be partial; padding content is undefined, so
        # mask it out of the sums.
        thw = x_ref.shape[2]
        col = jax.lax.broadcasted_iota(jnp.int32, (1, 1, thw), 2)
        xf = jnp.where(j * thw + col < hw_total, xf, 0.0)

    s1 = jnp.sum(jnp.sum(xf, axis=2, keepdims=True), axis=0, keepdims=True)[0]
    s2 = jnp.sum(jnp.sum(xf * xf, axis=2, keepdims=True), axis=0, keepdims=True)[0]

    @pl.when(j == 0)
    def _():
        s1_ref[...] = s1
        s2_ref[...] = s2

    @pl.when(j != 0)
    def _():
        s1_ref[...] += s1
        s2_ref[...] += s2


def _adain_apply_kernel(x_ref, alpha_ref, offset_ref, o_ref):
    """Two-pass path, pass 2: y = alpha*x + offset (pure streaming)."""
    tc = x_ref.shape[1]
    C = alpha_ref.shape[0]
    if tc == C:
        al = alpha_ref[...]
        off = offset_ref[...]
    else:
        start = pl.multiple_of(pl.program_id(0) * tc, 8)
        al = alpha_ref[pl.ds(start, tc), :]
        off = offset_ref[pl.ds(start, tc), :]
    al = al[None, :, :]                                   # (1, tc, 1)
    off = off[None, :, :]                                 # (1, tc, 1)
    o_ref[...] = (x_ref[...].astype(jnp.float32) * al + off).astype(o_ref.dtype)


# ---------------------------------------------------------------------------
# Tile / VMEM planning
# ---------------------------------------------------------------------------

def _vmem_capacity_bytes():
    try:
        cap = getattr(pltpu.get_tpu_info(), "vmem_capacity_bytes", None)
        if cap:
            return int(cap)
    except Exception:
        pass
    return 64 * 1024 * 1024   # conservative fallback (v7x per-core VMEM)


def _dtype_gran(itemsize):
    # Sub-32-bit dtypes pack along sublanes: keep full packed sublanes.
    if itemsize == 1:
        return 32
    if itemsize == 2:
        return 16
    return 8


def _channel_tile_candidates(C, gran):
    """Divisors of C that are multiples of gran (preferred), else of 8, else C.
    When C >= 16, cap at C/2 so there are >=2 grid steps (v7x megacore)."""
    divs = [d for d in range(1, C + 1) if C % d == 0]
    mult_gran = [d for d in divs if d % gran == 0]
    mult8 = [d for d in divs if d % 8 == 0]
    cands = mult_gran or mult8 or [C]
    if C >= 16:
        halved = [d for d in cands if d <= C // 2]
        if halved:
            cands = halved
    return sorted(set(cands))


def _pick_channel_tile(N, C, HW, itemsize, gran, target_bytes):
    """Largest channel tile whose per-step working set (2x double-buffered
    input + 2x output + f32 temporaries) fits target_bytes; None -> two-pass."""
    per_chan = N * HW * (4 * itemsize + 8)
    feasible = [t for t in _channel_tile_candidates(C, gran)
                if t * per_chan <= target_bytes]
    return max(feasible) if feasible else None


def _pick_two_pass_tiles(N, C, HW, gran, factor, target_bytes):
    """(tc, thw) for a (C_tiles, HW_tiles) grid; thw is a multiple of 128 or HW."""
    cands = _channel_tile_candidates(C, gran)
    full_hw = [t for t in cands if N * t * HW * factor <= target_bytes]
    if full_hw:
        return max(full_hw), HW
    t = min(cands)
    max_elems = max(target_bytes // (N * t * factor), 1)
    thw = (max_elems // 128) * 128
    if thw < 128:
        # TODO(synk): for extreme N even a 128-wide spatial tile exceeds the
        # budget; a batch-tiled 3-axis grid would be needed.
        thw = 128
    if thw >= HW:
        thw = HW
    return t, thw


# ---------------------------------------------------------------------------
# Wrappers
# ---------------------------------------------------------------------------

def _fused_single_pass(x3, gamma2d, beta2d, a, b, eps, count, tc, vmem_limit):
    N, C, HW = x3.shape
    num_tiles = C // tc
    ab = jnp.array([a, b], dtype=jnp.float32)

    grid_spec = pltpu.PrefetchScalarGridSpec(
        num_scalar_prefetch=1,   # ab lands in SMEM, passed as first kernel ref
        grid=(num_tiles,),
        in_specs=[
            pl.BlockSpec((N, tc, HW), lambda i, ab: (0, i, 0)),
            # gamma/beta: full array, constant index -> fetched once, no
            # per-step re-DMA.
            pl.BlockSpec((C, 1), lambda i, ab: (0, 0)),
            pl.BlockSpec((C, 1), lambda i, ab: (0, 0)),
        ],
        out_specs=pl.BlockSpec((N, tc, HW), lambda i, ab: (0, i, 0)),
    )

    return pl.pallas_call(
        functools.partial(_adain_fused_kernel, eps=eps, count=count),
        out_shape=jax.ShapeDtypeStruct((N, C, HW), x3.dtype),
        grid_spec=grid_spec,
        compiler_params=pltpu.CompilerParams(
            # Channel tiles are independent; shards across v7x's 2 TCs.
            # TODO(synk): if profiling shows one v7x core idle, try
            # pltpu.CORE_PARALLEL / pl.core_map here.
            dimension_semantics=("parallel",),
            vmem_limit_bytes=vmem_limit,
        ),
    )(ab, x3, gamma2d, beta2d)


def _two_pass(x3, gamma2d, beta2d, a, b, eps, count, itemsize, gran, target,
              vmem_limit):
    N, C, HW = x3.shape

    # ---- pass 1: per-channel sum / sum-of-squares --------------------------
    f1 = 2 * itemsize + 8          # 2x in (double-buffered) + f32 copy + x*x
    tc1, thw1 = _pick_two_pass_tiles(N, C, HW, gran, f1, target)
    nc1 = C // tc1
    nhw1 = pl.cdiv(HW, thw1)
    mask_tail = (HW % thw1) != 0

    s1, s2 = pl.pallas_call(
        functools.partial(_adain_stats_kernel, hw_total=HW, mask_tail=mask_tail),
        out_shape=(jax.ShapeDtypeStruct((C, 1), jnp.float32),
                   jax.ShapeDtypeStruct((C, 1), jnp.float32)),
        grid_spec=pltpu.PrefetchScalarGridSpec(
            num_scalar_prefetch=0,
            grid=(nc1, nhw1),
            in_specs=[pl.BlockSpec((N, tc1, thw1), lambda i, j: (0, i, j))],
            out_specs=[pl.BlockSpec((tc1, 1), lambda i, j: (i, 0)),
                       pl.BlockSpec((tc1, 1), lambda i, j: (i, 0))],
        ),
        compiler_params=pltpu.CompilerParams(
            dimension_semantics=("parallel", "arbitrary"),
            vmem_limit_bytes=vmem_limit,
        ),
    )(x3)

    # ---- tiny per-channel math in plain JAX (C elements) --------------------
    a32 = jnp.asarray(a, jnp.float32)
    b32 = jnp.asarray(b, jnp.float32)
    inv_cnt = 1.0 / count
    mean = s1 * inv_cnt
    var = jnp.maximum(s2 * inv_cnt - mean * mean, 0.0)
    inv = jax.lax.rsqrt(var + eps)
    coef = (b32 * gamma2d) * inv
    alpha = a32 + coef                                    # (C, 1)
    offset = b32 * beta2d - coef * mean                   # (C, 1)

    # ---- pass 2: y = alpha*x + offset ---------------------------------------
    f2 = 4 * itemsize + 8          # 2x in + 2x out (double-buffered) + f32 tmp
    tc2, thw2 = _pick_two_pass_tiles(N, C, HW, gran, f2, target)
    nc2 = C // tc2
    nhw2 = pl.cdiv(HW, thw2)

    return pl.pallas_call(
        _adain_apply_kernel,
        out_shape=jax.ShapeDtypeStruct((N, C, HW), x3.dtype),
        grid_spec=pltpu.PrefetchScalarGridSpec(
            num_scalar_prefetch=0,
            grid=(nc2, nhw2),
            in_specs=[pl.BlockSpec((N, tc2, thw2), lambda i, j: (0, i, j)),
                      pl.BlockSpec((C, 1), lambda i, j: (0, 0)),
                      pl.BlockSpec((C, 1), lambda i, j: (0, 0))],
            out_specs=pl.BlockSpec((N, tc2, thw2), lambda i, j: (0, i, j)),
        ),
        compiler_params=pltpu.CompilerParams(
            dimension_semantics=("parallel", "parallel"),
            vmem_limit_bytes=vmem_limit,
        ),
    )(x3, alpha, offset)


def adaptive_instance_norm_2d(x, gamma, beta, a, b, *, eps=1e-5,
                              force_two_pass=False):
    """x: (N, C, H, W). gamma/beta: (C,). a, b: python/JAX scalars.

    Matches `a * x + b * BatchNorm2d(x)` with BatchNorm2d in training mode
    (batch statistics over (N, H, W) — NOT per-instance, despite the name).
    """
    N, C, H, W = x.shape
    HW = H * W
    count = float(N * HW)
    itemsize = jnp.dtype(x.dtype).itemsize

    # Free (contiguous) reshape -- no transpose, no extra HBM traffic.
    x3 = x.reshape(N, C, HW)
    gamma2d = gamma.reshape(C, 1).astype(jnp.float32)
    beta2d = beta.reshape(C, 1).astype(jnp.float32)

    # Per-generation sizing: per-step block budget ~ VMEM/8 (16 MiB on
    # v5e/v6e, 8 MiB on v7x), scoped VMEM limit ~ min(0.75*VMEM, 96 MiB).
    vmem_cap = _vmem_capacity_bytes()
    target = max(vmem_cap // 8, 4 * 1024 * 1024)
    vmem_limit = min((vmem_cap * 3) // 4, 96 * 1024 * 1024)
    gran = _dtype_gran(itemsize)

    tc = None if force_two_pass else _pick_channel_tile(
        N, C, HW, itemsize, gran, target)

    if tc is not None:
        out3 = _fused_single_pass(x3, gamma2d, beta2d, a, b, eps, count, tc,
                                  vmem_limit)
    else:
        out3 = _two_pass(x3, gamma2d, beta2d, a, b, eps, count, itemsize,
                         gran, target, vmem_limit)
    return out3.reshape(N, C, H, W)


# ---------------------------------------------------------------------------
# Reference & test
# ---------------------------------------------------------------------------

def _reference(x, gamma, beta, a, b, eps=1e-5):
    """Pure-JAX reference mirroring `a*x + b*BatchNorm2d(x)` (training mode)."""
    mean = jnp.mean(x, axis=(0, 2, 3), keepdims=True)
    var = jnp.var(x, axis=(0, 2, 3), keepdims=True)  # biased
    x_bn = (x - mean) / jnp.sqrt(var + eps)
    x_bn = x_bn * gamma[None, :, None, None] + beta[None, :, None, None]
    return a * x + b * x_bn


if __name__ == "__main__":
    key = jax.random.PRNGKey(0)
    k_x, k_g, k_b, k_ab = jax.random.split(key, 4)

    N, C, H, W = 2, 4, 16, 16
    x = jax.random.normal(k_x, (N, C, H, W), dtype=jnp.float32)

    # Deterministic parameter init (shapes from __init__):
    #   bn.weight (C,), bn.bias (C,), a (1,1,1,1) scalar, b (1,1,1,1) scalar.
    gamma = 1.0 + 0.1 * jax.random.normal(k_g, (C,), dtype=jnp.float32)
    beta = 0.1 * jax.random.normal(k_b, (C,), dtype=jnp.float32)
    ab = jax.random.normal(k_ab, (2,), dtype=jnp.float32)
    a_param, b_param = ab[0], ab[1]

    ref = _reference(x, gamma, beta, a_param, b_param)

    # Fast fused path (what these shapes select automatically).
    out = adaptive_instance_norm_2d(x, gamma, beta, a_param, b_param)
    out = jax.block_until_ready(out)
    assert out.shape == (N, C, H, W)
    assert jnp.allclose(out, ref, rtol=1e-5, atol=1e-5), "fused path mismatch"

    # Also exercise the large-input two-pass fallback path (used when the
    # per-channel (N, H*W) block would not fit the VMEM budget, e.g. v7x).
    out2 = adaptive_instance_norm_2d(x, gamma, beta, a_param, b_param,
                                     force_two_pass=True)
    out2 = jax.block_until_ready(out2)
    assert jnp.allclose(out2, ref, rtol=1e-5, atol=1e-5), "two-pass path mismatch"

    print("KERNEL_OK")
</pallas_src>

<mosaic_0001>
module attributes {stable_mosaic.version = 11 : i64} {
  func.func @_adain_fused_kernel(%arg0: i32, %arg1: memref<2xf32, #tpu.memory_space<smem>>, %arg2: memref<2x4x256xf32, #tpu.memory_space<vmem>>, %arg3: memref<4x1xf32, #tpu.memory_space<vmem>>, %arg4: memref<4x1xf32, #tpu.memory_space<vmem>>, %arg5: memref<2x4x256xf32, #tpu.memory_space<vmem>>) attributes {dimension_semantics = [#tpu.dimension_semantics<parallel>], iteration_bounds = array<i64: 1>, scalar_prefetch = 1 : i64, scratch_operands = 0 : i64, tpu.core_type = #tpu.core_type<tc>, window_params = [{transform_indices = @transform_0, window_bounds = array<i64: 2, 4, 256>}, {pipeline_mode = #tpu.pipeline_mode<synchronous>, transform_indices = @transform_1, window_bounds = array<i64: 4, 1>}, {pipeline_mode = #tpu.pipeline_mode<synchronous>, transform_indices = @transform_2, window_bounds = array<i64: 4, 1>}, {transform_indices = @transform_3, window_bounds = array<i64: 2, 4, 256>}]} {
    %c0 = arith.constant 0 : index
    %c0_0 = arith.constant 0 : index
    %c0_1 = arith.constant 0 : index
    %0 = vector.load %arg2[%c0, %c0_0, %c0_1] : memref<2x4x256xf32, #tpu.memory_space<vmem>>, vector<2x4x256xf32>
    %cst = arith.constant dense<0.000000e+00> : vector<2x4xf32>
    %1 = vector.multi_reduction <add>, %0, %cst [2] : vector<2x4x256xf32> to vector<2x4xf32>
    %2 = vector.shape_cast %1 : vector<2x4xf32> to vector<2x4x1xf32>
    %cst_2 = arith.constant dense<0.000000e+00> : vector<4x1xf32>
    %3 = vector.multi_reduction <add>, %2, %cst_2 [0] : vector<2x4x1xf32> to vector<4x1xf32>
    %4 = vector.shape_cast %3 : vector<4x1xf32> to vector<1x4x1xf32>
    %5 = arith.mulf %0, %0 : vector<2x4x256xf32>
    %cst_3 = arith.constant dense<0.000000e+00> : vector<2x4xf32>
    %6 = vector.multi_reduction <add>, %5, %cst_3 [2] : vector<2x4x256xf32> to vector<2x4xf32>
    %7 = vector.shape_cast %6 : vector<2x4xf32> to vector<2x4x1xf32>
    %cst_4 = arith.constant dense<0.000000e+00> : vector<4x1xf32>
    %8 = vector.multi_reduction <add>, %7, %cst_4 [0] : vector<2x4x1xf32> to vector<4x1xf32>
    %9 = vector.shape_cast %8 : vector<4x1xf32> to vector<1x4x1xf32>
    %cst_5 = arith.constant 0.001953125 : f32
    %10 = vector.broadcast %cst_5 : f32 to vector<1x4x1xf32>
    %11 = arith.mulf %4, %10 : vector<1x4x1xf32>
    %cst_6 = arith.constant 0.001953125 : f32
    %12 = vector.broadcast %cst_6 : f32 to vector<1x4x1xf32>
    %13 = arith.mulf %9, %12 : vector<1x4x1xf32>
    %14 = arith.mulf %11, %11 : vector<1x4x1xf32>
    %15 = arith.subf %13, %14 : vector<1x4x1xf32>
    %cst_7 = arith.constant 0.000000e+00 : f32
    %16 = vector.broadcast %cst_7 : f32 to vector<1x4x1xf32>
    %17 = arith.maximumf %15, %16 : vector<1x4x1xf32>
    %cst_8 = arith.constant 9.99999974E-6 : f32
    %18 = vector.broadcast %cst_8 : f32 to vector<1x4x1xf32>
    %19 = arith.addf %17, %18 : vector<1x4x1xf32>
    %20 = math.rsqrt %19 : vector<1x4x1xf32>
    %c0_9 = arith.constant 0 : index
    %21 = memref.load %arg1[%c0_9] : memref<2xf32, #tpu.memory_space<smem>>
    %c1 = arith.constant 1 : index
    %22 = memref.load %arg1[%c1] : memref<2xf32, #tpu.memory_space<smem>>
    %c0_10 = arith.constant 0 : index
    %c0_11 = arith.constant 0 : index
    %23 = vector.load %arg3[%c0_10, %c0_11] : memref<4x1xf32, #tpu.memory_space<vmem>>, vector<4x1xf32>
    %c0_12 = arith.constant 0 : index
    %c0_13 = arith.constant 0 : index
    %24 = vector.load %arg4[%c0_12, %c0_13] : memref<4x1xf32, #tpu.memory_space<vmem>>, vector<4x1xf32>
    %25 = vector.shape_cast %23 : vector<4x1xf32> to vector<1x4x1xf32>
    %26 = vector.shape_cast %24 : vector<4x1xf32> to vector<1x4x1xf32>
    %27 = vector.broadcast %22 : f32 to vector<1x4x1xf32>
    %28 = arith.mulf %27, %25 : vector<1x4x1xf32>
    %29 = arith.mulf %28, %20 : vector<1x4x1xf32>
    %30 = vector.broadcast %21 : f32 to vector<1x4x1xf32>
    %31 = arith.addf %30, %29 : vector<1x4x1xf32>
    %32 = vector.broadcast %22 : f32 to vector<1x4x1xf32>
    %33 = arith.mulf %32, %26 : vector<1x4x1xf32>
    %34 = arith.mulf %29, %11 : vector<1x4x1xf32>
    %35 = arith.subf %33, %34 : vector<1x4x1xf32>
    %36 = vector.broadcast %31 : vector<1x4x1xf32> to vector<2x4x256xf32>
    %37 = arith.mulf %0, %36 : vector<2x4x256xf32>
    %38 = vector.broadcast %35 : vector<1x4x1xf32> to vector<2x4x256xf32>
    %39 = arith.addf %37, %38 : vector<2x4x256xf32>
    %c0_14 = arith.constant 0 : index
    %c0_15 = arith.constant 0 : index
    %c0_16 = arith.constant 0 : index
    %40 = vector.load %arg5[%c0_14, %c0_15, %c0_16] : memref<2x4x256xf32, #tpu.memory_space<vmem>>, vector<2x4x256xf32>
    tpu.vector_store %arg5[%c0_14, %c0_15, %c0_16], %39 {strides = array<i32>} : memref<2x4x256xf32, #tpu.memory_space<vmem>>, vector<2x4x256xf32>,
    return
  }
  func.func @transform_0(%arg0: i32, %arg1: memref<2xf32, #tpu.memory_space<smem>>) -> (i32, i32, i32) {
    %c0_i32 = arith.constant 0 : i32
    %c0_i32_0 = arith.constant 0 : i32
    %c0_i32_1 = arith.constant 0 : i32
    return %c0_i32, %arg0, %c0_i32_0 : i32, i32, i32
  }
  func.func @transform_1(%arg0: i32, %arg1: memref<2xf32, #tpu.memory_space<smem>>) -> (i32, i32) {
    %c0_i32 = arith.constant 0 : i32
    %c0_i32_0 = arith.constant 0 : i32
    %c0_i32_1 = arith.constant 0 : i32
    return %c0_i32, %c0_i32_0 : i32, i32
  }
  func.func @transform_2(%arg0: i32, %arg1: memref<2xf32, #tpu.memory_space<smem>>) -> (i32, i32) {
    %c0_i32 = arith.constant 0 : i32
    %c0_i32_0 = arith.constant 0 : i32
    %c0_i32_1 = arith.constant 0 : i32
    return %c0_i32, %c0_i32_0 : i32, i32
  }
  func.func @transform_3(%arg0: i32, %arg1: memref<2xf32, #tpu.memory_space<smem>>) -> (i32, i32, i32) {
    %c0_i32 = arith.constant 0 : i32
    %c0_i32_0 = arith.constant 0 : i32
    %c0_i32_1 = arith.constant 0 : i32
    return %c0_i32, %arg0, %c0_i32_0 : i32, i32, i32
  }
}

</mosaic_0001>

<bundles_post_ra>
// kernel: tpu_custom_call.1
= control target key start
LH: loop header
LB: loop body
LE: loop exit
PB: predicated region body
PF: predicated region fallthrough
CT: control target
= control target key end

     0   :  { %s298_s0 = inlined_call_operand.vmem [shape: f32[2], index: 0, kind: input, shape index: {}]   ;;  %s299_s1 = inlined_call_operand.hbm [shape: f32[2,4,256], index: 1, kind: input, shape index: {}]   ;;  %s300_s2 = inlined_call_operand.vmem [shape: f32[4,1], index: 2, kind: input, shape index: {}]   ;;  %s301_s3 = inlined_call_operand.vmem [shape: f32[4,1], index: 3, kind: input, shape index: {}]   ;;  %s302_s4 = inlined_call_operand.hbm [shape: f32[2,4,256], index: 4, kind: output, shape index: {}]  }
   0x1   :  { %s9_s17 = sshll.u32 %s298_s0, 4  ;;  %s10_s17 = int_to_ptr.vmem [resolvable:$true] %s9_s17 }
   0x2   :  { %s159_s18 = scalar_lea.vmem %s10_s17, 16  ;;  %p164_p1 = scmp.lt.s32.totalorder %s10_s17, %s10_s17 }
   0x3   :  { %p160_p0 = scmp.ne.s32.totalorder %s10_s17, %s159_s18  ;;  %p165_p2 = scmp.lt.s32.totalorder %s159_s18, %s159_s18 }
   0x5   :  { %p166_p3 = por %p165_p2, %p164_p1 }
   0x7   :  { %p167_p4 = pnand %p166_p3, %p160_p0 }
   0x9   :  { %170 = shalt.err (!%p167_p4)  }
   0xa   :  { %s217_s19 = smov [#allocation3]  }
   0xb   :  { %12 = dma.vmem_to_smem %s10_s17, 16, %s217_s19, [#allocation2] }
   0xc   :  { %211 = dma.done.wait [#allocation2], 16 }
   0xd   :  { %212 = vsyncadd [#allocation2], 4294967280 }
   0xe   :  { %14 = sfence }
   0xf   :  { %15 = vsyncpa [#allocation5], 0 }
  0x10   :  { %16 = vsyncpa [#allocation6], 0  ;;  %s218_s20 = smov [#allocation4]  }
  0x11   :  { %s22_s21 = sshll.u32 %s218_s20, 4  ;;  %s23_s21 = int_to_ptr.vmem [resolvable:$true] %s22_s21 }
  0x12   :  { %s179_s22 = scalar_lea.vmem %s23_s21, 256  ;;  %p184_p6 = scmp.lt.s32.totalorder %s23_s21, %s23_s21 }
  0x13   :  { %p180_p5 = scmp.ne.s32.totalorder %s23_s21, %s179_s22  ;;  %p185_p7 = scmp.lt.s32.totalorder %s179_s22, %s179_s22 }
  0x15   :  { %p186_p8 = por %p185_p7, %p184_p6 }
  0x17   :  { %p187_p9 = pnand %p186_p8, %p180_p5 }
  0x19   :  { %190 = shalt.err (!%p187_p9)
}
  0x1a   :  { %s219_s0 = smov 128   ;;  %s220_s23 = smov 8  }
  0x1b   :  { %28 = dma.hbm_to_vmem [thread:$0]  %s299_s1, 256, %s23_s21, [#allocation5], %s219_s0, %s219_s0, %s220_s23  }
  0x1c   :  { %213 = dma.done.wait [#allocation5], 256  }
  0x1d   :  { %214 = vsyncadd [#allocation5], 4294967040  ;;  %vm44_vm0 = vcmask 1043456   ;;  %v258_v0 = vld [vmem:[#allocation4] sm:$0xff]  ;;  %v260_v1 = vld [vmem:[#allocation4 + $0x8] sm:$0xff]  ;;  %v221_v20 = vmov 0   ;;  %v105_v50 = vlaneseq }
  0x1e   :  { %v40_v2 = vcombine.high %v258_v0, %v258_v0  ;;  %v45_v3 = vsel %vm44_vm0, %v258_v0, 0.0  ;;  %v58_v4 = vmul.f32 %v258_v0, %v258_v0  ;;  %v41_v5 = vcombine.high %v260_v1, %v260_v1  ;;  %153 = vset.pattern.permute.xlu0 %v221_v20  ;;  %154 = vset.pattern.permute.xlu1 %v221_v20  ;;  %s145_s1 = sld [smem:[#allocation3 + $0x1]]  ;;  %v88_v37 = vld [vmem:[%s300_s2] sm:$0xf]  ;;  %s223_s2 = smov [#allocation7]  }
  0x1f   :  { %v50_v6 = vsel %vm44_vm0, %v260_v1, 0.0  ;;  %v59_v7 = vmul.f32 %v260_v1, %v260_v1  ;;  %s86_s26 = sld [smem:[#allocation3]]  ;;  %v89_v40 = vld [vmem:[%s301_s3] sm:$0xf]  ;;  %v222_v48 = vmov 839922192  }
  0x20   :  { %v46_v8 = vsel %vm44_vm0, %v40_v2, 0.0  ;;  %v62_v9 = vcombine.high %v58_v4, %v58_v4  ;;  %v66_v10 = vsel %vm44_vm0, %v58_v4, 0.0  ;;  %v51_v11 = vsel %vm44_vm0, %v41_v5, 0.0  ;;  %s133_s3 = sshll.u32 %s223_s2, 4  ;;  %s134_s3 = int_to_ptr.vmem [resolvable:$true] %s133_s3 }
  0x21   :  { %v47_v12 = vadd.f32 %v46_v8, %v45_v3  ;;  %v63_v13 = vcombine.high %v59_v7, %v59_v7  ;;  %v71_v15 = vsel %vm44_vm0, %v59_v7, 0.0  ;;  %v52_v17 = vadd.f32 %v51_v11, %v50_v6  ;;  %s191_s5 = scalar_lea.vmem %s134_s3, 256  ;;  %p196_p11 = scmp.lt.s32.totalorder %s134_s3, %s134_s3 }
  0x22   :  { %v67_v14 = vsel %vm44_vm0, %v62_v9, 0.0  ;;  %v103_v49 = vunpack.c.l.s4 %v222_v48  ;;  %v106_v52 = vshrl.u32 %v105_v50, 7  ;;  %p192_p10 = scmp.ne.s32.totalorder %s134_s3, %s191_s5  ;;  %p197_p12 = scmp.lt.s32.totalorder %s191_s5, %s191_s5 }
  0x23   :  { %48 = vadd.xlane.f32.xlu0 %v47_v12  ;;  %v68_v16 = vadd.f32 %v67_v14, %v66_v10  ;;  %v72_v18 = vsel %vm44_vm0, %v63_v13, 0.0 }
  0x24   :  { %v73_v19 = vadd.f32 %v72_v18, %v71_v15  ;;  %v90_v38 = vstv %s145_s1  ;;  %v104_v51 = vunpack.c.0.s8 %v103_v49  ;;  %p198_p13 = por %p197_p12, %p196_p11 }
  0x25   :  { %69 = vadd.xlane.f32.xlu1 %v68_v16  ;;  %v91_v39 = vmul.f32 %v90_v38, %v88_v37  ;;  %v93_v42 = vstv %s86_s26  ;;  %v95_v44 = vmul.f32 %v90_v38, %v89_v40 }
  0x26   :  { %v107_v53 = vsub.s32 %v104_v51, %v106_v52  ;;  %p199_p0 = pnand %p198_p13, %p192_p10 }
  0x27   :  { %53 = vadd.xlane.f32.xlu0 %v52_v17 }
  0x29   :  { %74 = vadd.xlane.f32.xlu1 %v73_v19 }
  0xac   :  { %v49_v21 = vpop.xlane.xlu0 %48 }
  0xad   :  { %v55_v24 = vsel %vm44_vm0, %v49_v21, 0.0 }
  0xae   :  { %v70_v22 = vpop.xlane.xlu1 %69 }
  0xaf   :  { %v76_v28 = vsel %vm44_vm0, %v70_v22, 0.0 }
  0xb0   :  { %v54_v23 = vpop.xlane.xlu0 %53 }
  0xb1   :  { %v56_v25 = vsel %vm44_vm0, %v54_v23, 0.0 }
  0xb2   :  { %v57_v26 = vadd.f32 %v56_v25, %v55_v24  ;;  %v75_v27 = vpop.xlane.xlu1 %74 }
  0xb3   :  { %v77_v29 = vsel %vm44_vm0, %v75_v27, 0.0 }
  0xb4   :  { %v79_v30 = vmul.f32 0.001953125, %v57_v26  ;;  %v78_v31 = vadd.f32 %v77_v29, %v76_v28 }
  0xb6   :  { %v81_v32 = vmul.f32 %v79_v30, %v79_v30  ;;  %v80_v33 = vmul.f32 0.001953125, %v78_v31 }
  0xb8   :  { %v82_v34 = vsub.f32 %v80_v33, %v81_v32 }
  0xba   :  { %v83_v35 = vmax.f32 %v82_v34, 0.0 }
  0xbc   :  { %v84_v36 = vadd.f32 1e-05, %v83_v35 }
  0xbe   :  { %157 = vrsqrt.f32 %v84_v36 }
  0xcb   :  { %v158_v41 = vpop.eup %157 }
  0xcc   :  { %v92_v43 = vmul.f32 %v158_v41, %v91_v39 }
  0xce   :  { %v94_v45 = vadd.f32 %v93_v42, %v92_v43  ;;  %v96_v46 = vmul.f32 %v92_v43, %v79_v30 }
  0xd0   :  { %100 = vperm.xlu0 %153, %v94_v45   ;;  %v97_v47 = vsub.f32 %v95_v44, %v96_v46 }
  0xd2   :  { %114 = vperm.xlu1 %154, %v97_v47  }
 0x14b   :  { %v101_v54 = vpop.permute.xlu0 %100 }
 0x14c   :  { %v108_v55 = vrot.slane %v101_v54, %v107_v53 }
 0x14d   :  { %v115_v56 = vpop.permute.xlu1 %114 }
 0x14e   :  { %v110_v57 = vmul.f32 %v108_v55, %v258_v0  ;;  %v111_v58 = vmul.f32 %v108_v55, %v260_v1  ;;  %v122_v59 = vrot.slane %v115_v56, %v107_v53 }
 0x150   :  { %v124_v60 = vadd.f32 %v122_v59, %v110_v57  ;;  %v125_v61 = vadd.f32 %v122_v59, %v111_v58 }
 0x152   :  { %126 = vst [vmem:[#allocation7] sm:$0xff] %v124_v60  ;;  %127 = vst [vmem:[#allocation7 + $0x8] sm:$0xff] %v125_v61 }
 0x153   :  { %202 = shalt.err (!%p199_p0)
}
 0x154   :  { %139 = dma.vmem_to_hbm [thread:$0]  %s134_s3, 256, %s302_s4, [#allocation6], %s219_s0, %s219_s0, %s220_s23  }
 0x155   :  { %215 = dma.done.wait [#allocation6], 256  }
 0x156   :  { %216 = vsyncadd [#allocation6], 4294967040 }
 0x157   :  { %143 = vsyncpa [#allocation5], 1 }
 0x158   :  { %144 = vsyncpa [#allocation6], 1 }

</bundles_post_ra>
